<compile_context>
chip_gen: v7x
topology: tpu7x:2x2x1
jax: 0.10.0
libtpu: 0.0.40
codegen_flags: <defaults>
</compile_context>

<pallas_src>
import functools

import jax
import jax.numpy as jnp
from jax.experimental import pallas as pl
from jax.experimental.pallas import tpu as pltpu


def _rbf_kernel(dists_ref, c_ref, g_ref, out_ref, *, max_dist, n_rbf):
    # dists_ref : (1, tN, M)        VMEM
    # c_ref     : (1, M*n_rbf)      VMEM (centres tiled M times, lane-dense)
    # g_ref     : (1, M*n_rbf)      VMEM (-0.5 / widths**2 tiled M times)
    # out_ref   : (1, tN, M*n_rbf)  VMEM (lane-dense flattened (M, n_rbf))
    d = dists_ref[...]                                            # (1, tN, M)
    if max_dist is not None:
        d = jnp.minimum(d, jnp.asarray(max_dist, d.dtype))        # clamp(max=)

    _, t_n, m = d.shape
    # Lane-dense repeat: output lane j = m_idx * n_rbf + r holds d[..., m_idx].
    d_rep = jnp.broadcast_to(d[..., None], (1, t_n, m, n_rbf))
    d_rep = d_rep.reshape(1, t_n, m * n_rbf)                      # (1, tN, M*n_rbf)

    c = c_ref[...].reshape(1, 1, m * n_rbf)                       # broadcast over tN
    g = g_ref[...].reshape(1, 1, m * n_rbf)

    diff = d_rep - c
    out_ref[...] = jnp.exp(g * (diff * diff)).astype(out_ref.dtype)


def _choose_tile_n(n, m, n_rbf, itemsize, target_bytes=2 << 20):
    """Largest multiple-of-8 divisor of n whose output block fits target_bytes."""
    row_bytes = max(1, m * n_rbf * itemsize)
    max_rows = max(1, target_bytes // row_bytes)
    candidates = [t for t in range(8, n + 1, 8) if n % t == 0]
    if not candidates:
        return n  # full extent satisfies the (8,128) rule via the full-dim escape
    fitting = [t for t in candidates if t <= max_rows]
    return max(fitting) if fitting else min(candidates)


def radial_basis_features(dists, centres, widths, *, max_dist=5.0,
                          target_block_bytes=2 << 20):
    """Pallas implementation of RadialBasisFeatures.forward.

    dists:   (B, N, M) float32
    centres: (n_rbf,)  float32
    widths:  (n_rbf,)  float32
    returns: (B, N, M, n_rbf) float32
    """
    B, N, M = dists.shape
    n_rbf = centres.shape[0]
    dtype = dists.dtype
    itemsize = jnp.dtype(dtype).itemsize

    # Hoisted parameter prep: exp(-0.5 * ((d - c) / w)^2) == exp(g * (d - c)^2)
    # with g = -0.5 / w^2 (removes the per-element divide and -0.5 multiply).
    g = (-0.5 / (widths.astype(jnp.float32) ** 2)).astype(dtype)
    c = centres.astype(dtype)

    # Lane-dense parameter rows: index j = m*n_rbf + r holds value for rbf r.
    c_tiled = jnp.tile(c, M).reshape(1, M * n_rbf)
    g_tiled = jnp.tile(g, M).reshape(1, M * n_rbf)

    t_n = _choose_tile_n(N, M, n_rbf, itemsize, target_block_bytes)
    grid = (B, N // t_n)

    kernel = functools.partial(_rbf_kernel, max_dist=max_dist, n_rbf=n_rbf)

    flat_out = pl.pallas_call(
        kernel,
        out_shape=jax.ShapeDtypeStruct((B, N, M * n_rbf), dtype),
        grid_spec=pltpu.PrefetchScalarGridSpec(
            num_scalar_prefetch=0,
            grid=grid,
            in_specs=[
                pl.BlockSpec((1, t_n, M), lambda b, n: (b, n, 0)),
                pl.BlockSpec((1, M * n_rbf), lambda b, n: (0, 0)),
                pl.BlockSpec((1, M * n_rbf), lambda b, n: (0, 0)),
            ],
            out_specs=pl.BlockSpec((1, t_n, M * n_rbf), lambda b, n: (b, n, 0)),
        ),
        compiler_params=pltpu.CompilerParams(
            dimension_semantics=("parallel", "parallel"),
        ),
        cost_estimate=pl.CostEstimate(
            flops=int(3 * B * N * M * n_rbf),
            transcendentals=int(B * N * M * n_rbf),
            bytes_accessed=int(
                (B * N * M + 2 * M * n_rbf + B * N * M * n_rbf) * itemsize
            ),
        ),
    )(dists, c_tiled, g_tiled)

    # Free contiguous reshape back to the PyTorch output layout.
    return flat_out.reshape(B, N, M, n_rbf)


def make_rbf_params(n_rbf, max_dist=5.0, dtype=jnp.float32):
    """Deterministic parameter init matching the PyTorch __init__."""
    centres = jnp.linspace(0.0, max_dist, n_rbf, dtype=dtype)
    width = centres[1] - centres[0] if n_rbf > 1 else jnp.asarray(1.0, dtype)
    widths = jnp.full((n_rbf,), width, dtype=dtype)
    return centres, widths


def _reference(dists, centres, widths, max_dist):
    d = jnp.minimum(dists, max_dist) if max_dist is not None else dists
    c = centres.reshape(1, 1, 1, -1)
    w = widths.reshape(1, 1, 1, -1)
    return jnp.exp(-0.5 * ((d[..., None] - c) / w) ** 2)


if __name__ == "__main__":
    key = jax.random.PRNGKey(0)

    B, N, M = 2, 8, 8
    n_rbf = 16
    max_dist = 5.0

    # pairwise-distance-like input (non-negative, some beyond max_dist to
    # exercise the clamp)
    dists = jax.random.uniform(key, (B, N, M), dtype=jnp.float32) * 8.0

    centres, widths = make_rbf_params(n_rbf, max_dist)

    out = radial_basis_features(dists, centres, widths, max_dist=max_dist)
    out = jax.block_until_ready(out)

    ref = _reference(dists, centres, widths, max_dist)
    assert out.shape == (B, N, M, n_rbf)
    assert jnp.allclose(out, ref, atol=1e-5, rtol=1e-5), "mismatch vs reference"

    print("KERNEL_OK")
</pallas_src>

<mosaic_0001>
module attributes {stable_mosaic.version = 11 : i64} {
  func.func @_rbf_kernel(%arg0: i32, %arg1: i32, %arg2: memref<1x8x8xf32, #tpu.memory_space<vmem>>, %arg3: memref<1x128xf32, #tpu.memory_space<vmem>>, %arg4: memref<1x128xf32, #tpu.memory_space<vmem>>, %arg5: memref<1x8x128xf32, #tpu.memory_space<vmem>>) attributes {dimension_semantics = [#tpu.dimension_semantics<parallel>, #tpu.dimension_semantics<parallel>], iteration_bounds = array<i64: 2, 1>, scalar_prefetch = 0 : i64, scratch_operands = 0 : i64, tpu.core_type = #tpu.core_type<tc>, window_params = [{transform_indices = @transform_0, window_bounds = array<i64: 1, 8, 8>}, {pipeline_mode = #tpu.pipeline_mode<synchronous>, transform_indices = @transform_1, window_bounds = array<i64: 1, 128>}, {pipeline_mode = #tpu.pipeline_mode<synchronous>, transform_indices = @transform_2, window_bounds = array<i64: 1, 128>}, {transform_indices = @transform_3, window_bounds = array<i64: 1, 8, 128>}]} {
    %c0 = arith.constant 0 : index
    %c0_0 = arith.constant 0 : index
    %c0_1 = arith.constant 0 : index
    %0 = vector.load %arg2[%c0, %c0_0, %c0_1] : memref<1x8x8xf32, #tpu.memory_space<vmem>>, vector<1x8x8xf32>
    %cst = arith.constant 5.000000e+00 : f32
    %1 = vector.broadcast %cst : f32 to vector<1x8x8xf32>
    %2 = arith.minimumf %0, %1 : vector<1x8x8xf32>
    %3 = vector.shape_cast %2 : vector<1x8x8xf32> to vector<1x8x8x1xf32>
    %4 = vector.shape_cast %3 : vector<1x8x8x1xf32> to vector<1x8x8x1xf32>
    %5 = vector.broadcast %4 : vector<1x8x8x1xf32> to vector<1x8x8x16xf32>
    %6 = vector.shape_cast %5 : vector<1x8x8x16xf32> to vector<1x8x128xf32>
    %c0_2 = arith.constant 0 : index
    %c0_3 = arith.constant 0 : index
    %7 = vector.load %arg3[%c0_2, %c0_3] : memref<1x128xf32, #tpu.memory_space<vmem>>, vector<1x128xf32>
    %8 = vector.shape_cast %7 : vector<1x128xf32> to vector<1x1x128xf32>
    %c0_4 = arith.constant 0 : index
    %c0_5 = arith.constant 0 : index
    %9 = vector.load %arg4[%c0_4, %c0_5] : memref<1x128xf32, #tpu.memory_space<vmem>>, vector<1x128xf32>
    %10 = vector.shape_cast %9 : vector<1x128xf32> to vector<1x1x128xf32>
    %11 = vector.broadcast %8 : vector<1x1x128xf32> to vector<1x8x128xf32>
    %12 = arith.subf %6, %11 : vector<1x8x128xf32>
    %13 = arith.mulf %12, %12 : vector<1x8x128xf32>
    %14 = vector.broadcast %10 : vector<1x1x128xf32> to vector<1x8x128xf32>
    %15 = arith.mulf %14, %13 : vector<1x8x128xf32>
    %16 = math.exp %15 : vector<1x8x128xf32>
    %c0_6 = arith.constant 0 : index
    %c0_7 = arith.constant 0 : index
    %c0_8 = arith.constant 0 : index
    %17 = vector.load %arg5[%c0_6, %c0_7, %c0_8] : memref<1x8x128xf32, #tpu.memory_space<vmem>>, vector<1x8x128xf32>
    tpu.vector_store %arg5[%c0_6, %c0_7, %c0_8], %16 {strides = array<i32>} : memref<1x8x128xf32, #tpu.memory_space<vmem>>, vector<1x8x128xf32>,
    return
  }
  func.func @transform_0(%arg0: i32, %arg1: i32) -> (i32, i32, i32) {
    %c0_i32 = arith.constant 0 : i32
    %c0_i32_0 = arith.constant 0 : i32
    return %arg0, %arg1, %c0_i32 : i32, i32, i32
  }
  func.func @transform_1(%arg0: i32, %arg1: i32) -> (i32, i32) {
    %c0_i32 = arith.constant 0 : i32
    %c0_i32_0 = arith.constant 0 : i32
    %c0_i32_1 = arith.constant 0 : i32
    return %c0_i32, %c0_i32_0 : i32, i32
  }
  func.func @transform_2(%arg0: i32, %arg1: i32) -> (i32, i32) {
    %c0_i32 = arith.constant 0 : i32
    %c0_i32_0 = arith.constant 0 : i32
    %c0_i32_1 = arith.constant 0 : i32
    return %c0_i32, %c0_i32_0 : i32, i32
  }
  func.func @transform_3(%arg0: i32, %arg1: i32) -> (i32, i32, i32) {
    %c0_i32 = arith.constant 0 : i32
    %c0_i32_0 = arith.constant 0 : i32
    return %arg0, %arg1, %c0_i32 : i32, i32, i32
  }
}

</mosaic_0001>

<bundles_post_ra>
// kernel: tpu_custom_call.1
= control target key start
LH: loop header
LB: loop body
LE: loop exit
PB: predicated region body
PF: predicated region fallthrough
CT: control target
= control target key end

     0   :  { %8 = vsyncpa [#allocation3], 0  ;;  %s969_s0 = inlined_call_operand.hbm [shape: f32[2,8,8], index: 0, kind: input, shape index: {}]   ;;  %s970_s1 = inlined_call_operand.vmem [shape: f32[1,128], index: 1, kind: input, shape index: {}]   ;;  %s971_s2 = inlined_call_operand.vmem [shape: f32[1,128], index: 2, kind: input, shape index: {}]   ;;  %s972_s3 = inlined_call_operand.hbm [shape: f32[2,8,128], index: 3, kind: output, shape index: {}]  }
   0x1   :  { %10 = vsyncpa [#allocation3 + $0x1], 0 }
   0x2   :  { %11 = vsyncpa [#allocation4], 0 }
   0x3   :  { %13 = vsyncpa [#allocation4 + $0x1], 0  ;;  %s787_s12 = smov 0   ;;  %s789_s13 = smov 0  }
   0x4   :  { %s791_s14 = smov 0   ;;  %s793_s15 = smov 0  }
   0x5   :  { %s795_s16 = smov 0   ;;  %s797_s17 = smov 0  }
   0x6 LB: > { %s554_s18 = sadd.s32 4294967295, %s754_s17   ;;  %s555_s19 = sadd.s32 4294967294, %s754_s17   ;;  %s754_s17 = sphi %s797_s17, %s19_s17   ;;  %s750_s16 = sphi %s795_s16, %s988_s16   ;;  %s746_s15 = sphi %s793_s15, %s987_s15   ;;  %s742_s14 = sphi %s791_s14, %s986_s14   ;;  %s738_s13 = sphi %s789_s13, %s985_s13   ;;  %s734_s12 = sphi %s787_s12, %s984_s12  }
   0x7   : > { %s31_s20 = sadd.s32 1, %s750_s16  ;;  %s40_s21 = sadd.s32 1, %s742_s14 }
   0x8   : > { %p33_p0 = scmp.ge.s32.totalorder %s31_s20, 2  ;;  %p47_p1 = scmp.ne.s32.totalorder %s742_s14, %s738_s13 }
   0x9   : > { %p48_p2 = scmp.eq.s32.totalorder %s754_s17, 0  ;;  %p53_p3 = scmp.ne.s32.totalorder %s738_s13, %s734_s12 }
   0xa   : > { %s990_s20 = smov (%p33_p0, %s31_s20), 0  ;;  %p54_p5 = scmp.eq.s32.totalorder %s554_s18, 0 }
   0xb   : > { %p828_p4 = por %p48_p2, %p47_p1  ;;  %s35_s23 = ssub.s32 %s750_s16, %s990_s20 }
   0xc   : > { %p121_p6 = scmp.eq.s32.totalorder %s554_s18, 1  ;;  %p38_p7 = scmp.eq.s32.totalorder %s35_s23, 0 }
   0xd   : > { %p834_p8 = por %p54_p5, %p53_p3  ;;  %p127_p10 = scmp.eq.s32.totalorder %s555_s19, 1 }
   0xe   : > { %p838_p9 = por %p121_p6, %p47_p1  ;;  %p581_p13 = scmp.lt.s32.totalorder %s754_s17, 2 }
   0xf   : > { %s843_s26 = scalar_select %p38_p7, %s742_s14, %s40_s21  }
  0x10   : > { %s976_s25 = scalar_select %p838_p9, 1, 0 }
  0x11   : > { %p845_p11 = por %p127_p10, %p53_p3  ;;  %s153_s28 = sand.u32 1, %s742_s14  }
  0x12   : > { %s558_s29 = sshll.u32 %s153_s28, 3  ;;  %s559_s30 = sshll.u32 %s750_s16, 7 }
  0x13   : > { %s977_s27 = scalar_select %p845_p11, 1, 0 }
  0x14   : > { %s856_s6 = scalar_lea.hbm %s969_s0, %s559_s30  ;;  %s157_s7 = scalar_lea.vmem [#allocation2], %s558_s29 }
  0x15   : > { %s165_s8 = sshll.u32 %s157_s7, 4  ;;  %p862_p0 = pnand %p581_p13, %p828_p4  ;;  %s858_s8 = int_to_ptr.vmem [resolvable:$true] %s165_s8 }
  0x16   : > { %s154_s10 = scalar_lea.sflag [#allocation3], %s153_s28  ;;  %s642_s11 = scalar_lea.hbm %s856_s6, 128 }
  0x17   : > { %p643_p3 = scmp.ne.s32.totalorder %s856_s6, %s642_s11  ;;  %p644_p5 = pneg %p862_p0 }
  0x18   : > { %s647_s21 = scalar_lea.hbm %s969_s0, 256  ;;  %p648_p4 = scmp.lt.u32.totalorder %s856_s6, %s969_s0 }
  0x19   : > { %p645_p6 = pnand %p644_p5, %p643_p3  ;;  %p649_p10 = scmp.lt.u32.totalorder %s647_s21, %s642_s11 }
  0x1a   : > { %p651_p12 = scmp.lt.u32.totalorder %s642_s11, %s856_s6 }
  0x1b   : > { %p646_p7 = pneg %p645_p6  ;;  %p650_p13 = por %p649_p10, %p648_p4 }
  0x1d   : > { %p652_p1 = por %p651_p12, %p650_p13 }
  0x1f   : > { %p653_p2 = pnand %p652_p1, %p646_p7 }
  0x21   : > { %656 = shalt.err (!%p653_p2)
}
  0x22   : > { %s657_s28 = scalar_lea.vmem %s858_s8, 128  ;;  %s756_s29 = smov [#allocation2]  }
  0x23   : > { %p658_p3 = scmp.ne.s32.totalorder %s858_s8, %s657_s28  ;;  %s662_s30 = sshll.u32 %s756_s29, 4  ;;  %s663_s30 = int_to_ptr.vmem [resolvable:$false] %s662_s30 }
  0x24   : > { %s664_s4 = scalar_lea.vmem %s663_s30, 256  ;;  %p665_p9 = scmp.lt.s32.totalorder %s858_s8, %s663_s30 }
  0x25   : > { %p660_p6 = pnand %p658_p3, %p644_p5  ;;  %p666_p4 = scmp.lt.s32.totalorder %s664_s4, %s657_s28 }
  0x27   : > { %p661_p11 = pneg %p660_p6  ;;  %p667_p10 = por %p666_p4, %p665_p9 }
  0x29   : > { %p668_p12 = pnand %p667_p10, %p661_p11 }
  0x2b   : > { %671 = shalt.err (!%p668_p12)
}
  0x2c   : > { %576 = dma.hbm_to_vmem [thread:$0]  (!%p862_p0), %s856_s6, 128, %s858_s8, %s154_s10  }
  0x2d   : > { %p979_p1 = scmp.lt.s32.totalorder %s754_s17, 3  ;;  %p980_p2 = scmp.ge.s32.totalorder %s754_s17, 1 }
  0x2f   : > { %p171_p5 = pnand %p980_p2, %p979_p1 }
  0x30   : > { %s898_s5 = sand.u32 (!%p171_p5), 1, %s738_s13  }
  0x31   : > { %174 = sbr.rel (%p171_p5) target bundleno = 363 (0x16b), region = 32  ;;  %s561_s7 = sshll.u32 (!%p171_p5), %s898_s5, 3 }
  0x32   : > { %s177_s11 = scalar_lea.sflag (!%p171_p5), [#allocation3], %s898_s5  ;;  %s180_s9 = scalar_lea.vmem (!%p171_p5), [#allocation2], %s561_s7 }
  0x38   : > { %725 = dma.done.wait (%p834_p8), %s177_s11, 128  }
  0x39   : > { %727 = vsyncadd (%p834_p8), %s177_s11, 4294967168  ;;  %v205_v0 = vlaneseq  ;;  %v203_v4 = vld [vmem:[%s180_s9] sm:$0xff]  ;;  %v757_v21 = vmov 1983009808   ;;  %v758_v28 = vmov 1934713408  }
  0x3a   : > { %v204_v5 = vmin.f32 %v203_v4, 5.0  ;;  %v264_v22 = vunpack.c.l.s4 %v757_v21  ;;  %v328_v29 = vunpack.c.l.s4 %v758_v28  ;;  %s759_s24 = smov 32   ;;  %s760_s6 = smov 16   ;;  %vm425_vm0 = vcmask 130048   ;;  %v564_v28 = vld [vmem:[%s971_s2] ss:$0 sm:$0xff] }
  0x3b   : > { %v206_v1 = vshrl.u32 %v205_v0, 7  ;;  %s761_s8 = smov 64   ;;  %s762_s10 = smov 48   ;;  %vm427_vm1 = vcmask 261120   ;;  %vm429_vm2 = vcmask 392192   ;;  %vm431_vm3 = vcmask 523264  }
  0x3c   : > { %v265_v24 = vunpack.c.0.s8 %v264_v22  ;;  %v329_v36 = vunpack.c.0.s8 %v328_v29  ;;  %s763_s18 = smov 96   ;;  %s764_s19 = smov 80   ;;  %vm433_vm4 = vcmask 654336   ;;  %vm435_vm5 = vcmask 785408  }
  0x3d   : > { %v221_v2 = vsub.s32 2, %v206_v1  ;;  %v207_v3 = vsub.s32 0, %v206_v1  ;;  %v228_v6 = vsub.s32 3, %v206_v1  ;;  %v214_v7 = vsub.s32 1, %v206_v1  ;;  %s765_s21 = smov 112   ;;  %s566_s30 = sshll.u32 %s746_s15, 7 }
  0x3e   : > { %v242_v12 = vsub.s32 5, %v206_v1  ;;  %v235_v13 = vsub.s32 4, %v206_v1  ;;  %v256_v16 = vsub.s32 7, %v206_v1  ;;  %v249_v17 = vsub.s32 6, %v206_v1  ;;  %s202_s4 = scalar_lea.vmem [#allocation5], %s561_s7  ;;  %p981_p9 = scmp.ne.s32.totalorder %s976_s25, 0 }
  0x3f   : > { %v222_v8 = vrot.slane %v204_v5, %v221_v2  ;;  %v208_v9 = vrot.slane %v204_v5, %v207_v3  ;;  %v229_v10 = vrot.slane %v204_v5, %v228_v6  ;;  %v215_v11 = vrot.slane %v204_v5, %v214_v7  ;;  %s474_s11 = sshll.u32 %s202_s4, 4  ;;  %s766_s15 = smov [#allocation5]   ;;  %s922_s11 = int_to_ptr.vmem [resolvable:$true] %s474_s11 }
  0x40   : > { %v243_v14 = vrot.slane %v204_v5, %v242_v12  ;;  %v236_v15 = vrot.slane %v204_v5, %v235_v13  ;;  %v257_v18 = vrot.slane %v204_v5, %v256_v16  ;;  %v250_v19 = vrot.slane %v204_v5, %v249_v17  ;;  %s676_s7 = sshll.u32 %s766_s15, 4  ;;  %s677_s7 = int_to_ptr.vmem [resolvable:$false] %s676_s7 }
  0x41   : > { %224 = vbcast.lane.b32.xlu1 %v222_v8, 256  ;;  %210 = vbcast.lane.b32.xlu0 %v208_v9, 256  ;;  %v268_v30 = vsub.s32 %v265_v24, %v206_v1  ;;  %v332_v48 = vsub.s32 %v329_v36, %v206_v1  ;;  %vm437_vm6 = vcmask 916480   ;;  %p679_p7 = scmp.lt.s32.totalorder %s922_s11, %s677_s7 }
  0x45   : > { %231 = vbcast.lane.b32.xlu1 %v229_v10, 256  ;;  %217 = vbcast.lane.b32.xlu0 %v215_v11, 256 }
  0x49   : > { %245 = vbcast.lane.b32.xlu1 %v243_v14, 256  ;;  %238 = vbcast.lane.b32.xlu0 %v236_v15, 256 }
  0x4d   : > { %259 = vbcast.lane.b32.xlu1 %v257_v18, 256  ;;  %252 = vbcast.lane.b32.xlu0 %v250_v19, 256 }
  0xb3   : > { %v225_v20 = vpop.permute.xlu1 %224  ;;  %v211_v23 = vpop.permute.xlu0 %210 }
  0xb4   : > { %v261_v31 = vcombine.low %v211_v23, %v225_v20  ;;  %v262_v37 = vcombine.high %v211_v23, %v225_v20  ;;  %v563_v23 = vld [vmem:[%s970_s1] ss:$0 sm:$0xff] }
  0xb6   : > { %v269_v38 = vrot.slane %v261_v31, %v268_v30  ;;  %v276_v53 = vrot.slane %v262_v37, %v268_v30 }
  0xb7   : > { %v232_v25 = vpop.permute.xlu1 %231  ;;  %v218_v26 = vpop.permute.xlu0 %217 }
  0xb8   : > { %v277_v27 = vcombine.low %v218_v26, %v232_v25  ;;  %v278_v34 = vcombine.high %v218_v26, %v232_v25 }
  0xba   : > { %v285_v35 = vrot.slane %v277_v27, %v268_v30  ;;  %v292_v45 = vrot.slane %v278_v34, %v268_v30 }
  0xbb   : > { %v246_v32 = vpop.permute.xlu1 %245  ;;  %v239_v33 = vpop.permute.xlu0 %238 }
  0xbc   : > { %v325_v46 = vcombine.low %v269_v38, %v285_v35  ;;  %v326_v47 = vcombine.high %v269_v38, %v285_v35  ;;  %v341_v57 = vcombine.low %v276_v53, %v292_v45  ;;  %v342_v4 = vcombine.high %v276_v53, %v292_v45 }
  0xbe   : > { %v340_v58 = vrot.slane %v326_v47, %v332_v48  ;;  %v333_v60 = vrot.slane %v325_v46, %v332_v48  ;;  %v349_v1 = vrot.slane %v341_v57, %v332_v48  ;;  %v356_v8 = vrot.slane %v342_v4, %v332_v48 }
  0xbf   : > { %v260_v39 = vpop.permute.xlu1 %259  ;;  %v253_v40 = vpop.permute.xlu0 %252 }
  0xc0   : > { %v309_v41 = vcombine.low %v246_v32, %v260_v39  ;;  %v310_v42 = vcombine.high %v246_v32, %v260_v39  ;;  %v293_v43 = vcombine.low %v239_v33, %v253_v40  ;;  %v294_v44 = vcombine.high %v239_v33, %v253_v40 }
  0xc2   : > { %v317_v49 = vrot.slane %v309_v41, %v268_v30  ;;  %v324_v50 = vrot.slane %v310_v42, %v268_v30  ;;  %v301_v51 = vrot.slane %v293_v43, %v268_v30  ;;  %v308_v52 = vrot.slane %v294_v44, %v268_v30 }
  0xc4   : > { %v357_v54 = vcombine.low %v301_v51, %v317_v49  ;;  %v358_v55 = vcombine.high %v301_v51, %v317_v49  ;;  %v373_v56 = vcombine.low %v308_v52, %v324_v50  ;;  %v374_v62 = vcombine.high %v308_v52, %v324_v50 }
  0xc6   : > { %v372_v59 = vrot.slane %v358_v55, %v332_v48  ;;  %v365_v61 = vrot.slane %v357_v54, %v332_v48  ;;  %v381_v2 = vrot.slane %v373_v56, %v332_v48  ;;  %v388_v7 = vrot.slane %v374_v62, %v332_v48 }
  0xc8   : > { %v391_v63 = vcombine.low %v340_v58, %v372_v59  ;;  %v390_v0 = vcombine.high %v333_v60, %v365_v61  ;;  %v389_v3 = vcombine.low %v333_v60, %v365_v61  ;;  %v393_v5 = vcombine.low %v349_v1, %v381_v2 }
  0xc9   : > { %v392_v6 = vcombine.high %v340_v58, %v372_v59  ;;  %v395_v9 = vcombine.low %v356_v8, %v388_v7  ;;  %v394_v10 = vcombine.high %v349_v1, %v381_v2  ;;  %v396_v11 = vcombine.high %v356_v8, %v388_v7 }
  0xca   : > { %402 = vrot.lane.b32.xlu1 %v391_v63, %s759_s24  ;;  %398 = vrot.lane.b32.xlu0 %v390_v0, %s760_s6  ;;  %s920_s6 = scalar_lea.hbm %s972_s3, %s566_s30 }
  0xce   : > { %410 = vrot.lane.b32.xlu1 %v393_v5, %s761_s8  ;;  %406 = vrot.lane.b32.xlu0 %v392_v6, %s762_s10  ;;  %s460_s8 = scalar_lea.sflag [#allocation4], %s898_s5  ;;  %s672_s10 = scalar_lea.vmem %s922_s11, 128 }
  0xcf   : > { %p673_p8 = scmp.ne.s32.totalorder %s922_s11, %s672_s10 }
  0xd1   : > { %p674_p11 = pnand %p673_p8, %p981_p9 }
  0xd2   : > { %418 = vrot.lane.b32.xlu1 %v395_v9, %s763_s18  ;;  %414 = vrot.lane.b32.xlu0 %v394_v10, %s764_s19  ;;  %s678_s18 = scalar_lea.vmem %s677_s7, 256 }
  0xd3   : > { %p675_p0 = pneg %p674_p11  ;;  %p680_p13 = scmp.lt.s32.totalorder %s678_s18, %s672_s10 }
  0xd5   : > { %p681_p3 = por %p680_p13, %p679_p7 }
  0xd6   : > { %422 = vrot.lane.b32.xlu0 %v396_v11, %s765_s21 }
  0xd7   : > { %p682_p6 = pnand %p681_p3, %p675_p0 }
 0x13c   : > { %v403_v12 = vpop.permute.xlu1 %402  ;;  %v399_v13 = vpop.permute.xlu0 %398 }
 0x13d   : > { %v426_v14 = vsel %vm425_vm0, %v389_v3, %v399_v13 }
 0x13e   : > { %v428_v17 = vsel %vm427_vm1, %v426_v14, %v403_v12 }
 0x140   : > { %v411_v15 = vpop.permute.xlu1 %410  ;;  %v407_v16 = vpop.permute.xlu0 %406 }
 0x141   : > { %v430_v18 = vsel %vm429_vm2, %v428_v17, %v407_v16 }
 0x142   : > { %v432_v20 = vsel %vm431_vm3, %v430_v18, %v411_v15 }
 0x144   : > { %v415_v19 = vpop.permute.xlu0 %414  ;;  %v419_v21 = vpop.permute.xlu1 %418 }
 0x145   : > { %v434_v22 = vsel %vm433_vm4, %v432_v20, %v415_v19 }
 0x146   : > { %v436_v25 = vsel %vm435_vm5, %v434_v22, %v419_v21 }
 0x148   : > { %v423_v24 = vpop.permute.xlu0 %422 }
 0x149   : > { %v438_v26 = vsel %vm437_vm6, %v436_v25, %v423_v24 }
 0x14a   : > { %v447_v27 = vsub.f32 %v438_v26, %v563_v23 }
 0x14c   : > { %v448_v29 = vmul.f32 %v447_v27, %v447_v27 }
 0x14e   : > { %v455_v30 = vmul.f32 %v564_v28, %v448_v29 }
 0x150   : > { %v456_v31 = vmul.f32 1.442695, %v455_v30 }
 0x152   : > { %640 = vpow2.f32 %v456_v31 }
 0x15c   : > { %v641_v32 = vpop.eup %640 }
 0x15d   : > { %458 = vst [vmem:[%s202_s4] sm:$0xff] %v641_v32 }
 0x15e   : > { %685 = shalt.err (!%p682_p6)
}
 0x15f   : > { %s686_s5 = scalar_lea.hbm %s920_s6, 128  ;;  %s690_s22 = scalar_lea.hbm %s972_s3, 256 }
 0x160   : > { %p687_p4 = scmp.ne.s32.totalorder %s920_s6, %s686_s5  ;;  %p691_p1 = scmp.lt.u32.totalorder %s920_s6, %s972_s3 }
 0x161   : > { %p692_p2 = scmp.lt.u32.totalorder %s690_s22, %s686_s5  ;;  %p694_p8 = scmp.lt.u32.totalorder %s686_s5, %s920_s6 }
 0x162   : > { %p688_p10 = pnand %p687_p4, %p981_p9 }
 0x163   : > { %p693_p5 = por %p692_p2, %p691_p1 }
 0x164   : > { %p689_p12 = pneg %p688_p10 }
 0x165   : > { %p695_p11 = por %p694_p8, %p693_p5 }
 0x167   : > { %p696_p0 = pnand %p695_p11, %p689_p12 }
 0x169   : > { %699 = shalt.err (!%p696_p0)
}
 0x16a   : > { %571 = dma.vmem_to_hbm [thread:$0]  (%p981_p9), %s922_s11, 128, %s920_s6, %s460_s8  }
 0x16b PF: > { %s486_s29 = sand.u32 1, %s734_s12   ;;  %p982_p7 = scmp.ne.s32.totalorder %s977_s27, 0 }
 0x16c   : > { %p983_p13 = scmp.ge.s32.totalorder %s754_s17, 2  ;;  %s487_s30 = scalar_lea.sflag [#allocation4], %s486_s29 }
 0x16e   : > { %p578_p3 = pnand %p983_p13, %p982_p7 }
 0x170   : > { %729 = dma.done.wait (!%p578_p3), %s487_s30, 128  }
 0x171   : > { %731 = vsyncadd (!%p578_p3), %s487_s30, 4294967168  ;;  %s19_s17 = sadd.s32 1, %s754_s17   ;;  %s984_s12 = smov %s738_s13 }
 0x172   : > { %p16_p6 = scmp.ge.s32.totalorder %s19_s17, 4   ;;  %s985_s13 = smov %s742_s14 }
 0x173   : > { %s986_s14 = smov %s843_s26  ;;  %s987_s15 = smov %s750_s16 }
 0x174   : > { %s988_s16 = smov %s990_s20  ;;  %18 = sbr.rel (!%p16_p6) target bundleno = 6 (0x6), region = 77 }
 0x17b   :  { %492 = vsyncpa [#allocation3], 1 }
 0x17c   :  { %494 = vsyncpa [#allocation3 + $0x1], 1 }
 0x17d   :  { %495 = vsyncpa [#allocation4], 1 }
 0x17e   :  { %497 = vsyncpa [#allocation4 + $0x1], 1 }

</bundles_post_ra>
